<compile_context>
chip_gen: v7x
topology: tpu7x:2x2x1
jax: 0.10.0
libtpu: 0.0.40
codegen_flags: <defaults>
</compile_context>

<pallas_src>
import jax
import jax.numpy as jnp
from jax.experimental import pallas as pl
from jax.experimental.pallas import tpu as pltpu


# ----------------------------------------------------------------------------
# Kernel
# ----------------------------------------------------------------------------
def _relu_kernel(x_ref, o_ref):
    # Pure VALU elementwise max with 0; no dtype upcast needed (ReLU is exact).
    x = x_ref[...]
    o_ref[...] = jnp.maximum(x, jnp.zeros_like(x))


# ----------------------------------------------------------------------------
# Helpers (all trace-time Python on static shapes)
# ----------------------------------------------------------------------------
def _cdiv(a: int, b: int) -> int:
    return -(-a // b)


def _round_up(x: int, m: int) -> int:
    return ((x + m - 1) // m) * m


def _sublane_pack(dtype) -> int:
    # Sublane packing of the dtype: f32 -> 8, bf16 -> 16, int8/fp8 -> 32.
    itemsize = jnp.dtype(dtype).itemsize
    return max(8, 32 // max(1, itemsize))


def _chip_params():
    """Per-generation (vmem_limit_bytes, target_block_bytes, tensorcores).

    Budget: in + out, each double-buffered  =>  ~4x block bytes live, so we
    keep 4 * block_bytes comfortably under vmem_limit_bytes, and the limit
    itself under the physical VMEM of the chip (v7x has only 64 MiB per TC).
    """
    kind = ""
    try:
        kind = jax.devices()[0].device_kind.lower()
    except Exception:
        pass
    if "7x" in kind or "v7" in kind:
        # v7x: 64 MiB VMEM / TC, 2 TCs share the "parallel" grid, ~3.2 TB/s HBM.
        return 44 << 20, 10 << 20, 2
    if "v6" in kind:
        # v6e: 128 MiB VMEM, 1 TC, ~1.4 TB/s HBM.
        return 80 << 20, 16 << 20, 1
    if "v5" in kind:
        # v5e / v5p: keep blocks modest but raise the scoped limit off 16 MiB.
        return 48 << 20, 8 << 20, 1
    # Unknown / older generation: conservative.
    return 32 << 20, 4 << 20, 1


def _choose_lane_cols(n: int, max_cols: int = 2048) -> int:
    """Largest multiple of 128 dividing n (capped), preferring >=8 rows.

    Returns 0 if n has no multiple-of-128 divisor (i.e. n % 128 != 0).
    """
    candidates = [c for c in range(128, min(max_cols, n) + 1, 128) if n % c == 0]
    if not candidates:
        return 0
    wide = [c for c in candidates if n // c >= 8]
    return max(wide) if wide else max(candidates)


# ----------------------------------------------------------------------------
# pallas_call wrapper over a 2-D slab
# ----------------------------------------------------------------------------
def _relu_2d(x2d: jax.Array, block_bytes: int, vmem_limit: int, cores: int):
    rows, cols = x2d.shape
    dtype = x2d.dtype
    pack = _sublane_pack(dtype)
    itemsize = jnp.dtype(dtype).itemsize

    # ---- lane (column) tile -------------------------------------------------
    # Main path always hands us cols % 128 == 0 and cols <= 2048 -> one block.
    # Fallback (cols not a multiple of 128): keep the whole dim in one block
    # when it is small; otherwise tile lanes at a 128-multiple so masked
    # stores / lane padding are confined to the single tail block.
    if cols % 128 == 0 or cols <= 4096:
        tc = cols
    else:
        # Account for sublane padding (blocks occupy >= `pack` sublanes in VMEM).
        tc = (block_bytes // (pack * itemsize) // 128) * 128
        tc = max(128, min(tc, (cols // 128) * 128))
    n_col_blocks = _cdiv(cols, tc)

    # ---- sublane (row) tile ---------------------------------------------------
    tr = block_bytes // max(1, tc * itemsize)
    tr = max(pack, (tr // pack) * pack)
    if tr >= rows:
        tr = rows  # full-dim block along rows is always legal
    n_row_blocks = _cdiv(rows, tr)

    # ---- megacore balance (v7x: 2 TCs share the parallel grid) --------------
    if cores > 1 and (n_row_blocks * n_col_blocks) % cores != 0 and rows > pack:
        target_steps = _round_up(max(n_row_blocks, 1), cores)
        new_tr = _round_up(_cdiv(rows, target_steps), pack)
        if new_tr < rows and (_cdiv(rows, new_tr) * n_col_blocks) % cores == 0:
            tr = new_tr
            n_row_blocks = _cdiv(rows, tr)

    grid = (n_row_blocks, n_col_blocks)
    return pl.pallas_call(
        _relu_kernel,
        out_shape=jax.ShapeDtypeStruct((rows, cols), dtype),
        grid_spec=pltpu.PrefetchScalarGridSpec(
            num_scalar_prefetch=0,
            grid=grid,
            in_specs=[pl.BlockSpec((tr, tc), lambda i, j: (i, j))],
            out_specs=pl.BlockSpec((tr, tc), lambda i, j: (i, j)),
        ),
        compiler_params=pltpu.CompilerParams(
            dimension_semantics=("parallel", "parallel"),
            vmem_limit_bytes=vmem_limit,
        ),
    )(x2d)


# ----------------------------------------------------------------------------
# Public entry point
# ----------------------------------------------------------------------------
@jax.jit
def relu(x: jax.Array) -> jax.Array:
    """Equivalent of torch.relu(x) (forward only)."""
    orig_shape = x.shape
    n = 1
    for s in orig_shape:
        n *= s
    if n == 0:
        return x

    vmem_limit, block_bytes, cores = _chip_params()

    cols = _choose_lane_cols(n)
    if cols > 0:
        # Lane-dense flat layout: cols is a multiple of 128 -> fully unmasked
        # vector stores, no transposes and no padding copies.
        rows = n // cols
    elif x.ndim >= 2:
        # n has no 128-multiple divisor: keep the trailing dim on lanes; the
        # column axis gets its own grid dimension inside _relu_2d.
        cols = orig_shape[-1]
        rows = n // cols
    else:
        rows, cols = 1, n

    out2d = _relu_2d(x.reshape(rows, cols), block_bytes, vmem_limit, cores)
    return out2d.reshape(orig_shape)


class ReLU:
    """Minimal JAX/Pallas port of the PyTorch ReLU module (forward only)."""

    def __init__(self, inplace: bool = False):
        # TODO(synk): `inplace` has no meaning in JAX's functional model;
        # kept only for API parity (would require buffer donation at the
        # jit boundary plus input_output_aliases to matter).
        self.inplace = inplace
        self.out = None

    def __call__(self, x):
        self.out = relu(x)
        return self.out

    def __repr__(self):
        return f"ReLU(inplace={self.inplace})"


if __name__ == "__main__":
    key = jax.random.PRNGKey(0)

    # NCHW input, like a typical PyTorch conv activation.
    x = jax.random.normal(key, (2, 4, 16, 16), dtype=jnp.float32)
    mod = ReLU()
    y = jax.block_until_ready(mod(x))
    ref = jnp.maximum(x, 0.0)
    assert y.shape == x.shape and y.dtype == x.dtype
    assert jnp.array_equal(y, ref)

    # bf16 input (exercises the 16-row sublane packing path).
    xb = jax.random.normal(jax.random.PRNGKey(1), (2, 4, 16, 16)).astype(jnp.bfloat16)
    yb = jax.block_until_ready(relu(xb))
    assert yb.dtype == jnp.bfloat16
    assert jnp.array_equal(yb, jnp.maximum(xb, jnp.zeros_like(xb)))

    # Shape whose element count is NOT a multiple of 128 (small fallback path).
    xo = jax.random.normal(jax.random.PRNGKey(2), (3, 5, 7), dtype=jnp.float32)
    yo = jax.block_until_ready(relu(xo))
    assert jnp.array_equal(yo, jnp.maximum(xo, 0.0))

    # 1-D, prime length > 4096: exercises the column-blocked ragged-tail path.
    xp = jax.random.normal(jax.random.PRNGKey(3), (5003,), dtype=jnp.float32)
    yp = jax.block_until_ready(relu(xp))
    assert jnp.array_equal(yp, jnp.maximum(xp, 0.0))

    print("KERNEL_OK")
</pallas_src>

<mosaic_0001>
module attributes {stable_mosaic.version = 11 : i64} {
  func.func @_relu_kernel(%arg0: i32, %arg1: i32, %arg2: memref<8x256xf32, #tpu.memory_space<vmem>>, %arg3: memref<8x256xf32, #tpu.memory_space<vmem>>) attributes {dimension_semantics = [#tpu.dimension_semantics<parallel>, #tpu.dimension_semantics<parallel>], iteration_bounds = array<i64: 1, 1>, scalar_prefetch = 0 : i64, scratch_operands = 0 : i64, tpu.core_type = #tpu.core_type<tc>, window_params = [{transform_indices = @transform_0, window_bounds = array<i64: 8, 256>}, {transform_indices = @transform_1, window_bounds = array<i64: 8, 256>}]} {
    %c0 = arith.constant 0 : index
    %c0_0 = arith.constant 0 : index
    %0 = vector.load %arg2[%c0, %c0_0] : memref<8x256xf32, #tpu.memory_space<vmem>>, vector<8x256xf32>
    %cst = arith.constant 0.000000e+00 : f32
    %1 = vector.broadcast %cst : f32 to vector<8x256xf32>
    %2 = arith.maximumf %0, %1 : vector<8x256xf32>
    %c0_1 = arith.constant 0 : index
    %c0_2 = arith.constant 0 : index
    %3 = vector.load %arg3[%c0_1, %c0_2] : memref<8x256xf32, #tpu.memory_space<vmem>>, vector<8x256xf32>
    tpu.vector_store %arg3[%c0_1, %c0_2], %2 {strides = array<i32>} : memref<8x256xf32, #tpu.memory_space<vmem>>, vector<8x256xf32>,
    return
  }
  func.func @transform_0(%arg0: i32, %arg1: i32) -> (i32, i32) {
    %c0_i32 = arith.constant 0 : i32
    return %arg0, %arg1 : i32, i32
  }
  func.func @transform_1(%arg0: i32, %arg1: i32) -> (i32, i32) {
    %c0_i32 = arith.constant 0 : i32
    return %arg0, %arg1 : i32, i32
  }
}

</mosaic_0001>

<bundles_post_ra>
// kernel: relu.1
= control target key start
LH: loop header
LB: loop body
LE: loop exit
PB: predicated region body
PF: predicated region fallthrough
CT: control target
= control target key end

     0   :  { %s40_s0 = inlined_call_operand.vmem [shape: f32[8,256], index: 0, kind: input, shape index: {}]   ;;  %s41_s1 = inlined_call_operand.vmem [shape: f32[8,256], index: 1, kind: output, shape index: {}]  }
   0x1   :  { %v8_v0 = vld [vmem:[%s40_s0] sm:$0xff]  ;;  %v9_v1 = vld [vmem:[%s40_s0 + $0x8] sm:$0xff] }
   0x2   :  { %v10_v2 = vmax.f32 %v8_v0, 0.0  ;;  %v11_v3 = vmax.f32 %v9_v1, 0.0 }
   0x4   :  { %12 = vst [vmem:[%s41_s1] sm:$0xff] %v10_v2  ;;  %13 = vst [vmem:[%s41_s1 + $0x8] sm:$0xff] %v11_v3 }

</bundles_post_ra>
